<compile_context>
chip_gen: v7x
topology: tpu7x:2x2x1
jax: 0.10.0
libtpu: 0.0.40
codegen_flags: <defaults>
</compile_context>

<pallas_src>
import jax
import jax.numpy as jnp
from jax.experimental import pallas as pl
from jax.experimental.pallas import tpu as pltpu

# ----- hyperparameters (small shapes consistent with the module) -----
D_MODEL = 32            # input_dim
EXP     = 4             # exp_factor  -> hidden = 128 (lane-dense)
SEQ_LEN = 8
BATCH   = 2
D_HID   = EXP * D_MODEL

TOKEN_TILE      = 256   # tm: (tm,128) f32 intermediate stays in vregs, amortizes MXU fill
SINGLE_SHOT_MAX = 512   # at/below this many tokens, skip the grid entirely


# ----------------------------- in-kernel math helpers -----------------------------
def _erf(x):
    # Abramowitz & Stegun 7.1.26 (|err| < ~1.5e-7 with exact divide); the
    # divide is routed to the EUP via pl.reciprocal(approx=True), which is
    # nearly free (its own bundle slot) and well within our tolerance.
    a1, a2, a3, a4, a5 = (0.254829592, -0.284496736, 1.421413741,
                          -1.453152027, 1.061405429)
    p = 0.3275911
    s = jnp.where(x >= 0.0, 1.0, -1.0)
    ax = jnp.abs(x)
    t = pl.reciprocal(1.0 + p * ax, approx=True)          # EUP vrcp
    poly = ((((a5 * t + a4) * t + a3) * t + a2) * t + a1) * t
    return s * (1.0 - poly * jnp.exp(-ax * ax))            # EUP exp


def _gelu(x):   # exact (erf-based) GELU, like torch.nn.GELU()
    return 0.5 * x * (1.0 + _erf(x * 0.7071067811865475))


# --------------------------------- the Pallas kernel -------------------------------
def ffn_kernel(x_ref, w1_ref, b1_ref, w2_ref, b2_ref, o_ref):
    x = x_ref[...]                                                    # (tm, D) bf16

    # fc1 (bf16 x bf16 -> f32 acc) -> bias -> GELU   (hidden = 128, lane-dense)
    h = jnp.dot(x, w1_ref[...], preferred_element_type=jnp.float32)  # (tm, H) f32
    h = _gelu(h + b1_ref[...])

    # Dropout(dropout_ratio) -> identity in eval/inference mode.
    # TODO(synk): a training-mode dropout path would need pltpu.prng_seed +
    # pltpu.prng_random_bits and a mask; not implemented here.

    # fc2 (bf16 x bf16 -> f32 acc) -> bias -> GELU
    h = h.astype(w2_ref.dtype)                                        # bf16 for MXU
    y = jnp.dot(h, w2_ref[...], preferred_element_type=jnp.float32)  # (tm, D) f32
    o_ref[...] = _gelu(y + b2_ref[...]).astype(o_ref.dtype)


# --------------------------------- wrapper -----------------------------------------
def ffn_apply(x, params, *, token_tile=TOKEN_TILE):
    """x: (B, L, D) float32 -> (B, L, D) float32.

    Weight contract: w1 is fc1.weight^T (D, H), w2 is fc2.weight^T (H, D),
    i.e. (in_features, out_features).  Biases are (1, H) / (1, D).
    """
    B, L, D = x.shape
    M = B * L

    # MXU operands in bf16 (native on v5e/v6e/v7x); bias/GELU math stays f32.
    w1 = params["w1"].astype(jnp.bfloat16)
    w2 = params["w2"].astype(jnp.bfloat16)
    b1 = params["b1"].astype(jnp.float32)
    b2 = params["b2"].astype(jnp.float32)
    H = w1.shape[1]
    x2 = x.reshape(M, D).astype(jnp.bfloat16)   # fold batch+seq into one token slab

    if M <= SINGLE_SHOT_MAX:
        # Single-shot, gridless call: whole operands live in VMEM, no pipeline
        # prologue/epilogue or double-buffering overhead for a 1-step grid.
        out = pl.pallas_call(
            ffn_kernel,
            out_shape=jax.ShapeDtypeStruct((M, D), jnp.float32),
        )(x2, w1, b1, w2, b2)
        return out.reshape(B, L, D)

    # Token-tiled path: tile the token axis; weights stay VMEM-resident
    # (constant index_map -> DMA'd once), token axis sharded across cores.
    n_tiles = pl.cdiv(M, token_tile)
    Mp = n_tiles * token_tile
    if Mp != M:
        x2 = jnp.pad(x2, ((0, Mp - M), (0, 0)))   # pad rows are finite garbage, sliced off

    out = pl.pallas_call(
        ffn_kernel,
        out_shape=jax.ShapeDtypeStruct((Mp, D), jnp.float32),
        grid_spec=pltpu.PrefetchScalarGridSpec(
            num_scalar_prefetch=0,
            grid=(n_tiles,),
            in_specs=[
                pl.BlockSpec((token_tile, D), lambda i: (i, 0)),   # activations
                pl.BlockSpec((D, H),          lambda i: (0, 0)),   # fc1.weight^T (resident)
                pl.BlockSpec((1, H),          lambda i: (0, 0)),   # fc1.bias     (resident)
                pl.BlockSpec((H, D),          lambda i: (0, 0)),   # fc2.weight^T (resident)
                pl.BlockSpec((1, D),          lambda i: (0, 0)),   # fc2.bias     (resident)
            ],
            out_specs=pl.BlockSpec((token_tile, D), lambda i: (i, 0)),
        ),
        compiler_params=pltpu.CompilerParams(
            dimension_semantics=("parallel",)),   # shards across v7x's 2 TCs
    )(x2, w1, b1, w2, b2)

    return out[:M].reshape(B, L, D)


# ------------------------------ deterministic init ---------------------------------
def init_params(key):
    ks = jax.random.split(key, 4)

    def rnd(k, shape, scale):
        return jax.random.normal(k, shape, jnp.float32) * scale

    return dict(
        w1=rnd(ks[0], (D_MODEL, D_HID), 0.08),    # fc1.weight^T  (in, out)
        b1=rnd(ks[1], (1, D_HID), 0.02),          # fc1.bias
        w2=rnd(ks[2], (D_HID, D_MODEL), 0.05),    # fc2.weight^T  (in, out)
        b2=rnd(ks[3], (1, D_MODEL), 0.02),        # fc2.bias
    )


# ------------------------------ pure-JAX reference ----------------------------------
def ffn_reference(x, params):
    h1 = jax.nn.gelu(x @ params["w1"] + params["b1"][0], approximate=False)
    h2 = jax.nn.gelu(h1 @ params["w2"] + params["b2"][0], approximate=False)
    return h2


if __name__ == "__main__":
    key = jax.random.PRNGKey(0)
    pkey, xkey, xkey2 = jax.random.split(key, 3)
    params = init_params(pkey)

    # Small shapes consistent with the module (single-shot, gridless path).
    x = jax.random.normal(xkey, (BATCH, SEQ_LEN, D_MODEL), jnp.float32)
    out = jax.block_until_ready(ffn_apply(x, params))
    assert out.shape == (BATCH, SEQ_LEN, D_MODEL)
    assert bool(jnp.all(jnp.isfinite(out)))
    ref = ffn_reference(x, params)
    # bf16 MXU operands + approx-EUP reciprocal -> compare at loose tolerance.
    assert bool(jnp.allclose(out, ref, rtol=2e-2, atol=2e-2)), \
        float(jnp.max(jnp.abs(out - ref)))

    # Larger token count: exercises the token-tiled grid path + padding.
    xb = jax.random.normal(xkey2, (4, 300, D_MODEL), jnp.float32)   # 1200 tokens
    outb = jax.block_until_ready(ffn_apply(xb, params))
    assert outb.shape == xb.shape
    assert bool(jnp.all(jnp.isfinite(outb)))
    refb = ffn_reference(xb, params)
    assert bool(jnp.allclose(outb, refb, rtol=2e-2, atol=2e-2)), \
        float(jnp.max(jnp.abs(outb - refb)))

    print("KERNEL_OK")
</pallas_src>

<mosaic_0001>
module attributes {stable_mosaic.version = 11 : i64} {
  func.func @ffn_kernel(%arg0: memref<16x32xbf16, #tpu.memory_space<vmem>>, %arg1: memref<32x128xbf16, #tpu.memory_space<vmem>>, %arg2: memref<1x128xf32, #tpu.memory_space<vmem>>, %arg3: memref<128x32xbf16, #tpu.memory_space<vmem>>, %arg4: memref<1x32xf32, #tpu.memory_space<vmem>>, %arg5: memref<16x32xf32, #tpu.memory_space<vmem>>) attributes {dimension_semantics = [], scalar_prefetch = 0 : i64, scratch_operands = 0 : i64, tpu.core_type = #tpu.core_type<tc>} {
    %c0 = arith.constant 0 : index
    %c0_0 = arith.constant 0 : index
    %0 = vector.load %arg0[%c0, %c0_0] : memref<16x32xbf16, #tpu.memory_space<vmem>>, vector<16x32xbf16>
    %c0_1 = arith.constant 0 : index
    %c0_2 = arith.constant 0 : index
    %1 = vector.load %arg1[%c0_1, %c0_2] : memref<32x128xbf16, #tpu.memory_space<vmem>>, vector<32x128xbf16>
    %cst = arith.constant dense<0.000000e+00> : vector<16x128xf32>
    %2 = tpu.matmul %0, %1, %cst {dimension_numbers = #tpu.dot_dimension_numbers<[1], [0], [0], [1], [0, 0, 1, 1], [], []>} : vector<16x32xbf16>, vector<32x128xbf16>, vector<16x128xf32> -> vector<16x128xf32>
    %c0_3 = arith.constant 0 : index
    %c0_4 = arith.constant 0 : index
    %3 = vector.load %arg2[%c0_3, %c0_4] : memref<1x128xf32, #tpu.memory_space<vmem>>, vector<1x128xf32>
    %4 = vector.broadcast %3 : vector<1x128xf32> to vector<16x128xf32>
    %5 = arith.addf %2, %4 : vector<16x128xf32>
    %cst_5 = arith.constant 5.000000e-01 : f32
    %6 = vector.broadcast %cst_5 : f32 to vector<16x128xf32>
    %7 = arith.mulf %6, %5 : vector<16x128xf32>
    %cst_6 = arith.constant 0.707106769 : f32
    %8 = vector.broadcast %cst_6 : f32 to vector<16x128xf32>
    %9 = arith.mulf %5, %8 : vector<16x128xf32>
    %cst_7 = arith.constant 0.000000e+00 : f32
    %10 = vector.broadcast %cst_7 : f32 to vector<16x128xf32>
    %11 = arith.cmpf oge, %9, %10 : vector<16x128xf32>
    %cst_8 = arith.constant 1.000000e+00 : f32
    %cst_9 = arith.constant -1.000000e+00 : f32
    %12 = vector.broadcast %cst_8 : f32 to vector<16x128xf32>
    %13 = vector.broadcast %cst_9 : f32 to vector<16x128xf32>
    %14 = arith.select %11, %12, %13 : vector<16x128xi1>, vector<16x128xf32>
    %15 = math.absf %9 : vector<16x128xf32>
    %cst_10 = arith.constant 0.327591091 : f32
    %16 = vector.broadcast %cst_10 : f32 to vector<16x128xf32>
    %17 = arith.mulf %16, %15 : vector<16x128xf32>
    %cst_11 = arith.constant 1.000000e+00 : f32
    %18 = vector.broadcast %cst_11 : f32 to vector<16x128xf32>
    %19 = arith.addf %18, %17 : vector<16x128xf32>
    %20 = tpu.reciprocal %19 {approx = true} : vector<16x128xf32> -> vector<16x128xf32>
    %cst_12 = arith.constant 1.06140542 : f32
    %21 = vector.broadcast %cst_12 : f32 to vector<16x128xf32>
    %22 = arith.mulf %21, %20 : vector<16x128xf32>
    %cst_13 = arith.constant -1.45315206 : f32
    %23 = vector.broadcast %cst_13 : f32 to vector<16x128xf32>
    %24 = arith.addf %22, %23 : vector<16x128xf32>
    %25 = arith.mulf %24, %20 : vector<16x128xf32>
    %cst_14 = arith.constant 1.42141378 : f32
    %26 = vector.broadcast %cst_14 : f32 to vector<16x128xf32>
    %27 = arith.addf %25, %26 : vector<16x128xf32>
    %28 = arith.mulf %27, %20 : vector<16x128xf32>
    %cst_15 = arith.constant -0.284496725 : f32
    %29 = vector.broadcast %cst_15 : f32 to vector<16x128xf32>
    %30 = arith.addf %28, %29 : vector<16x128xf32>
    %31 = arith.mulf %30, %20 : vector<16x128xf32>
    %cst_16 = arith.constant 0.254829586 : f32
    %32 = vector.broadcast %cst_16 : f32 to vector<16x128xf32>
    %33 = arith.addf %31, %32 : vector<16x128xf32>
    %34 = arith.mulf %33, %20 : vector<16x128xf32>
    %cst_17 = arith.constant 0.000000e+00 : f32
    %35 = vector.broadcast %cst_17 : f32 to vector<16x128xf32>
    %36 = arith.subf %35, %15 : vector<16x128xf32>
    %37 = arith.mulf %36, %15 : vector<16x128xf32>
    %38 = math.exp %37 : vector<16x128xf32>
    %39 = arith.mulf %34, %38 : vector<16x128xf32>
    %cst_18 = arith.constant 1.000000e+00 : f32
    %40 = vector.broadcast %cst_18 : f32 to vector<16x128xf32>
    %41 = arith.subf %40, %39 : vector<16x128xf32>
    %42 = arith.mulf %14, %41 : vector<16x128xf32>
    %cst_19 = arith.constant 1.000000e+00 : f32
    %43 = vector.broadcast %cst_19 : f32 to vector<16x128xf32>
    %44 = arith.addf %43, %42 : vector<16x128xf32>
    %45 = arith.mulf %7, %44 : vector<16x128xf32>
    %46 = arith.truncf %45 : vector<16x128xf32> to vector<16x128xbf16>
    %c0_20 = arith.constant 0 : index
    %c0_21 = arith.constant 0 : index
    %47 = vector.load %arg3[%c0_20, %c0_21] : memref<128x32xbf16, #tpu.memory_space<vmem>>, vector<128x32xbf16>
    %cst_22 = arith.constant dense<0.000000e+00> : vector<16x32xf32>
    %48 = tpu.matmul %46, %47, %cst_22 {dimension_numbers = #tpu.dot_dimension_numbers<[1], [0], [0], [1], [0, 0, 1, 1], [], []>} : vector<16x128xbf16>, vector<128x32xbf16>, vector<16x32xf32> -> vector<16x32xf32>
    %c0_23 = arith.constant 0 : index
    %c0_24 = arith.constant 0 : index
    %49 = vector.load %arg4[%c0_23, %c0_24] : memref<1x32xf32, #tpu.memory_space<vmem>>, vector<1x32xf32>
    %50 = vector.broadcast %49 : vector<1x32xf32> to vector<16x32xf32>
    %51 = arith.addf %48, %50 : vector<16x32xf32>
    %cst_25 = arith.constant 5.000000e-01 : f32
    %52 = vector.broadcast %cst_25 : f32 to vector<16x32xf32>
    %53 = arith.mulf %52, %51 : vector<16x32xf32>
    %cst_26 = arith.constant 0.707106769 : f32
    %54 = vector.broadcast %cst_26 : f32 to vector<16x32xf32>
    %55 = arith.mulf %51, %54 : vector<16x32xf32>
    %cst_27 = arith.constant 0.000000e+00 : f32
    %56 = vector.broadcast %cst_27 : f32 to vector<16x32xf32>
    %57 = arith.cmpf oge, %55, %56 : vector<16x32xf32>
    %cst_28 = arith.constant 1.000000e+00 : f32
    %cst_29 = arith.constant -1.000000e+00 : f32
    %58 = vector.broadcast %cst_28 : f32 to vector<16x32xf32>
    %59 = vector.broadcast %cst_29 : f32 to vector<16x32xf32>
    %60 = arith.select %57, %58, %59 : vector<16x32xi1>, vector<16x32xf32>
    %61 = math.absf %55 : vector<16x32xf32>
    %cst_30 = arith.constant 0.327591091 : f32
    %62 = vector.broadcast %cst_30 : f32 to vector<16x32xf32>
    %63 = arith.mulf %62, %61 : vector<16x32xf32>
    %cst_31 = arith.constant 1.000000e+00 : f32
    %64 = vector.broadcast %cst_31 : f32 to vector<16x32xf32>
    %65 = arith.addf %64, %63 : vector<16x32xf32>
    %66 = tpu.reciprocal %65 {approx = true} : vector<16x32xf32> -> vector<16x32xf32>
    %cst_32 = arith.constant 1.06140542 : f32
    %67 = vector.broadcast %cst_32 : f32 to vector<16x32xf32>
    %68 = arith.mulf %67, %66 : vector<16x32xf32>
    %cst_33 = arith.constant -1.45315206 : f32
    %69 = vector.broadcast %cst_33 : f32 to vector<16x32xf32>
    %70 = arith.addf %68, %69 : vector<16x32xf32>
    %71 = arith.mulf %70, %66 : vector<16x32xf32>
    %cst_34 = arith.constant 1.42141378 : f32
    %72 = vector.broadcast %cst_34 : f32 to vector<16x32xf32>
    %73 = arith.addf %71, %72 : vector<16x32xf32>
    %74 = arith.mulf %73, %66 : vector<16x32xf32>
    %cst_35 = arith.constant -0.284496725 : f32
    %75 = vector.broadcast %cst_35 : f32 to vector<16x32xf32>
    %76 = arith.addf %74, %75 : vector<16x32xf32>
    %77 = arith.mulf %76, %66 : vector<16x32xf32>
    %cst_36 = arith.constant 0.254829586 : f32
    %78 = vector.broadcast %cst_36 : f32 to vector<16x32xf32>
    %79 = arith.addf %77, %78 : vector<16x32xf32>
    %80 = arith.mulf %79, %66 : vector<16x32xf32>
    %cst_37 = arith.constant 0.000000e+00 : f32
    %81 = vector.broadcast %cst_37 : f32 to vector<16x32xf32>
    %82 = arith.subf %81, %61 : vector<16x32xf32>
    %83 = arith.mulf %82, %61 : vector<16x32xf32>
    %84 = math.exp %83 : vector<16x32xf32>
    %85 = arith.mulf %80, %84 : vector<16x32xf32>
    %cst_38 = arith.constant 1.000000e+00 : f32
    %86 = vector.broadcast %cst_38 : f32 to vector<16x32xf32>
    %87 = arith.subf %86, %85 : vector<16x32xf32>
    %88 = arith.mulf %60, %87 : vector<16x32xf32>
    %cst_39 = arith.constant 1.000000e+00 : f32
    %89 = vector.broadcast %cst_39 : f32 to vector<16x32xf32>
    %90 = arith.addf %89, %88 : vector<16x32xf32>
    %91 = arith.mulf %53, %90 : vector<16x32xf32>
    %c0_40 = arith.constant 0 : index
    %c0_41 = arith.constant 0 : index
    %92 = vector.load %arg5[%c0_40, %c0_41] : memref<16x32xf32, #tpu.memory_space<vmem>>, vector<16x32xf32>
    tpu.vector_store %arg5[%c0_40, %c0_41], %91 {strides = array<i32>} : memref<16x32xf32, #tpu.memory_space<vmem>>, vector<16x32xf32>,
    return
  }
}

</mosaic_0001>

<bundles_post_ra>
// kernel: tpu_custom_call.1
= control target key start
LH: loop header
LB: loop body
LE: loop exit
PB: predicated region body
PF: predicated region fallthrough
CT: control target
= control target key end

     0   :  { %v443_v1 = vmov 0.0   ;;  %vm444_vm0 = vmmov 0   ;;  %vm52_vm1 = vcmask 261120   ;;  %s537_s0 = inlined_call_operand.vmem [shape: bf16[16,32], index: 0, kind: input, shape index: {}]   ;;  %s538_s1 = inlined_call_operand.vmem [shape: bf16[32,128], index: 1, kind: input, shape index: {}]   ;;  %s539_s2 = inlined_call_operand.vmem [shape: f32[1,128], index: 2, kind: input, shape index: {}]   ;;  %s540_s3 = inlined_call_operand.vmem [shape: bf16[128,32], index: 3, kind: input, shape index: {}]   ;;  %s541_s4 = inlined_call_operand.vmem [shape: f32[1,32], index: 4, kind: input, shape index: {}]   ;;  %s542_s5 = inlined_call_operand.hbm [shape: f32[16,32], index: 5, kind: output, shape index: {}]  }
   0x1   :  { %v392_v0 = vld [vmem:[%s538_s1] sm:$0xff]   ;;  %358 = vmatprep.subr.bf16.mxu0 %v443_v1  ;;  %366 = vmatprep.subr.bf16.mxu1 %v443_v1  ;;  %v393_v2 = vld [vmem:[%s538_s1 + $0x8] sm:$0xff]  }
   0x2   :  { %359 = vmatpush3.bf16.msra.mxu0 %v392_v0  ;;  %362 = vmatprep.mubr.msk.bf16.mxu0 %vm444_vm0, %v443_v1  ;;  %v394_v3 = vld [vmem:[%s537_s0] sm:$0xff]  }
   0x3   :  { %360 = vmatprep.subr.bf16.mxu0 %v443_v1  ;;  %382 = vmatprep.mubr.msk.bf16.mxu1 %vm444_vm0, %v443_v1 }
   0x6   :  { %361 = vmatpush3.bf16.msra.mxu0 %v393_v2 }
   0x7   :  { %10 = vsyncpa [#allocation3], 0  ;;  %v395_v4 = vld [vmem:[%s540_s3] sm:$0xff]   ;;  %v396_v5 = vld [vmem:[%s540_s3 + $0x8] sm:$0xff]   ;;  %v445_v57 = vmov -1.0  }
   0x8   :  { %367 = vmatpush3.bf16.msra.mxu1 %v395_v4  ;;  %v397_v6 = vld [vmem:[%s540_s3 + $0x10] sm:$0xff]   ;;  %v398_v7 = vld [vmem:[%s540_s3 + $0x18] sm:$0xff]   ;;  %v399_v8 = vld [vmem:[%s540_s3 + $0x20] sm:$0xff]  }
   0x9   :  { %363 = vmatmul.mubr.msk.bf16.vlgmr.msra.gmra.mrb[0].mxu0 %vm52_vm1, %v394_v3  ;;  %368 = vmatprep.subr.bf16.mxu1 %v443_v1  ;;  %v400_v9 = vld [vmem:[%s540_s3 + $0x28] sm:$0xff]   ;;  %v401_v10 = vld [vmem:[%s540_s3 + $0x30] sm:$0xff]   ;;  %v402_v11 = vld [vmem:[%s540_s3 + $0x38] sm:$0xff]  }
   0xa   :  { %v332_v12 = vld [vmem:[%s539_s2] ss:$0 sm:$0xff] }
   0xc   :  { %369 = vmatpush3.bf16.msra.mxu1 %v396_v5 }
   0xd   :  { %370 = vmatprep.subr.bf16.mxu1 %v443_v1 }
  0x10   :  { %371 = vmatpush3.bf16.msra.mxu1 %v397_v6 }
  0x11   :  { %372 = vmatprep.subr.bf16.mxu1 %v443_v1 }
  0x14   :  { %373 = vmatpush3.bf16.msra.mxu1 %v398_v7  ;;  %v337_v7 = vld [vmem:[%s541_s4] ss:$0 sm:$0xff]  ;;  %s446_s4 = smov [#allocation2]  }
  0x15   :  { %374 = vmatprep.subr.bf16.mxu1 %v443_v1  ;;  %s321_s15 = sshll.u32 %s446_s4, 4  ;;  %s322_s15 = int_to_ptr.vmem [resolvable:$true] %s321_s15 }
  0x16   :  { %s419_s16 = scalar_lea.vmem %s322_s15, 256  ;;  %p424_p1 = scmp.lt.s32.totalorder %s322_s15, %s322_s15 }
  0x17   :  { %p420_p0 = scmp.ne.s32.totalorder %s322_s15, %s419_s16  ;;  %p425_p2 = scmp.lt.s32.totalorder %s419_s16, %s419_s16 }
  0x18   :  { %375 = vmatpush3.bf16.msra.mxu1 %v399_v8 }
  0x19   :  { %376 = vmatprep.subr.bf16.mxu1 %v443_v1  ;;  %p426_p3 = por %p425_p2, %p424_p1 }
  0x1b   :  { %p427_p4 = pnand %p426_p3, %p420_p0 }
  0x1c   :  { %377 = vmatpush3.bf16.msra.mxu1 %v400_v9 }
  0x1d   :  { %378 = vmatprep.subr.bf16.mxu1 %v443_v1 }
  0x20   :  { %379 = vmatpush3.bf16.msra.mxu1 %v401_v10 }
  0x21   :  { %380 = vmatprep.subr.bf16.mxu1 %v443_v1 }
  0x24   :  { %381 = vmatpush3.bf16.msra.mxu1 %v402_v11 }
  0xdc   :  { %v90_v13 = vpop.f32.mrb[0].mxu0 }
  0xdd   :  { %v91_v14 = vadd.f32 %v332_v12, %v90_v13  ;;  %v364_v15 = vpop.f32.mrb[1].mxu0 }
  0xde   :  { %v93_v16 = vpop.f32.mrb[2].mxu0 }
  0xdf   :  { %v99_v17 = vmul.f32 0.70710677, %v91_v14  ;;  %v94_v18 = vadd.f32 %v332_v12, %v93_v16  ;;  %v365_v19 = vpop.f32.mrb[3].mxu0  ;;  %v97_v1 = vmul.f32 0.5, %v91_v14 }
  0xe1   :  { %v105_v20 = vand.u32 2147483647, %v99_v17  ;;  %v100_v21 = vmul.f32 0.70710677, %v94_v18  ;;  %vm101_vm2 = vcmp.ge.f32.partialorder %v99_v17, 0.0  ;;  %v98_v2 = vmul.f32 0.5, %v94_v18 }
  0xe2   :  { %v103_v58 = vsel %vm101_vm2, 1.0, %v445_v57 }
  0xe3   :  { %v107_v22 = vmul.f32 0.3275911, %v105_v20  ;;  %v106_v23 = vand.u32 2147483647, %v100_v21  ;;  %v131_v27 = vsub.f32 0.0, %v105_v20  ;;  %vm102_vm3 = vcmp.ge.f32.partialorder %v100_v21, 0.0 }
  0xe4   :  { %v104_v62 = vsel %vm102_vm3, 1.0, %v445_v57 }
  0xe5   :  { %v109_v24 = vadd.f32 1.0, %v107_v22  ;;  %v108_v25 = vmul.f32 0.3275911, %v106_v23  ;;  %v132_v28 = vsub.f32 0.0, %v106_v23  ;;  %v133_v30 = vmul.f32 %v131_v27, %v105_v20 }
  0xe7   :  { %403 = vrcp.f32 %v109_v24  ;;  %v110_v26 = vadd.f32 1.0, %v108_v25  ;;  %v134_v34 = vmul.f32 %v132_v28, %v106_v23  ;;  %v135_v35 = vmul.f32 1.442695, %v133_v30 }
  0xe9   :  { %405 = vrcp.f32 %v110_v26  ;;  %v137_v40 = vmul.f32 1.442695, %v134_v34 }
  0xea   :  { %407 = vpow2.f32 %v135_v35 }
  0xeb   :  { %409 = vpow2.f32 %v137_v40 }
  0xf1   :  { %v404_v29 = vpop.eup %403 }
  0xf2   :  { %v113_v31 = vmul.f32 1.0614054, %v404_v29 }
  0xf3   :  { %v406_v32 = vpop.eup %405 }
  0xf4   :  { %v115_v33 = vadd.f32 -1.4531521, %v113_v31  ;;  %v114_v36 = vmul.f32 1.0614054, %v406_v32  ;;  %v408_v51 = vpop.eup %407 }
  0xf5   :  { %v410_v55 = vpop.eup %409 }
  0xf6   :  { %v117_v37 = vmul.f32 %v404_v29, %v115_v33  ;;  %v116_v38 = vadd.f32 -1.4531521, %v114_v36 }
  0xf8   :  { %v119_v39 = vadd.f32 1.4214138, %v117_v37  ;;  %v118_v41 = vmul.f32 %v406_v32, %v116_v38 }
  0xfa   :  { %v121_v42 = vmul.f32 %v404_v29, %v119_v39  ;;  %v120_v43 = vadd.f32 1.4214138, %v118_v41 }
  0xfc   :  { %v123_v44 = vadd.f32 -0.28449672, %v121_v42  ;;  %v122_v45 = vmul.f32 %v406_v32, %v120_v43 }
  0xfe   :  { %v125_v46 = vmul.f32 %v404_v29, %v123_v44  ;;  %v124_v47 = vadd.f32 -0.28449672, %v122_v45 }
 0x100   :  { %v127_v48 = vadd.f32 0.2548296, %v125_v46  ;;  %v126_v49 = vmul.f32 %v406_v32, %v124_v47 }
 0x102   :  { %v129_v50 = vmul.f32 %v404_v29, %v127_v48  ;;  %v128_v52 = vadd.f32 0.2548296, %v126_v49 }
 0x104   :  { %v139_v53 = vmul.f32 %v408_v51, %v129_v50  ;;  %v130_v54 = vmul.f32 %v406_v32, %v128_v52 }
 0x106   :  { %v141_v56 = vsub.f32 1.0, %v139_v53  ;;  %v140_v59 = vmul.f32 %v410_v55, %v130_v54 }
 0x108   :  { %v143_v60 = vmul.f32 %v141_v56, %v103_v58  ;;  %v142_v61 = vsub.f32 1.0, %v140_v59 }
 0x10a   :  { %v145_v63 = vadd.f32 1.0, %v143_v60  ;;  %v144_v0 = vmul.f32 %v142_v61, %v104_v62 }
 0x10c   :  { %v146_v3 = vadd.f32 1.0, %v144_v0  ;;  %v147_v4 = vmul.f32 %v145_v63, %v97_v1 }
 0x10e   :  { %v148_v5 = vmul.f32 %v146_v3, %v98_v2 }
 0x110   :  { %v149_v6 = vpack.c.bf16 %v148_v5, %v147_v4 }
 0x112   :  { %383 = vmatmul.mubr.bf16.vlgmr.msra.gmra.mrb[0].mxu1 %v149_v6 }
 0x1e5   :  { %v255_v8 = vpop.f32.mrb[0].mxu1 }
 0x1e6   :  { %v256_v9 = vadd.f32 %v337_v7, %v255_v8  ;;  %v384_v10 = vpop.f32.mrb[1].mxu1 }
 0x1e7   :  { %v258_v11 = vpop.f32.mrb[2].mxu1 }
 0x1e8   :  { %v264_v12 = vmul.f32 0.70710677, %v256_v9  ;;  %v259_v13 = vadd.f32 %v337_v7, %v258_v11  ;;  %v385_v15 = vpop.f32.mrb[3].mxu1  ;;  %v262_v56 = vmul.f32 0.5, %v256_v9 }
 0x1ea   :  { %v270_v16 = vand.u32 2147483647, %v264_v12  ;;  %v265_v17 = vmul.f32 0.70710677, %v259_v13  ;;  %vm266_vm4 = vcmp.ge.f32.partialorder %v264_v12, 0.0  ;;  %v263_v62 = vmul.f32 0.5, %v259_v13 }
 0x1eb   :  { %v268_v52 = vsel %vm266_vm4, 1.0, %v445_v57 }
 0x1ec   :  { %v272_v14 = vmul.f32 0.3275911, %v270_v16  ;;  %v271_v18 = vand.u32 2147483647, %v265_v17  ;;  %v296_v22 = vsub.f32 0.0, %v270_v16  ;;  %vm267_vm5 = vcmp.ge.f32.partialorder %v265_v17, 0.0 }
 0x1ed   :  { %v269_v59 = vsel %vm267_vm5, 1.0, %v445_v57 }
 0x1ee   :  { %v274_v19 = vadd.f32 1.0, %v272_v14  ;;  %v273_v20 = vmul.f32 0.3275911, %v271_v18  ;;  %v297_v23 = vsub.f32 0.0, %v271_v18  ;;  %v298_v25 = vmul.f32 %v296_v22, %v270_v16 }
 0x1f0   :  { %411 = vrcp.f32 %v274_v19  ;;  %v275_v21 = vadd.f32 1.0, %v273_v20  ;;  %v299_v29 = vmul.f32 %v297_v23, %v271_v18  ;;  %v300_v30 = vmul.f32 1.442695, %v298_v25 }
 0x1f2   :  { %413 = vrcp.f32 %v275_v21  ;;  %v302_v35 = vmul.f32 1.442695, %v299_v29 }
 0x1f3   :  { %415 = vpow2.f32 %v300_v30 }
 0x1f4   :  { %417 = vpow2.f32 %v302_v35 }
 0x1fa   :  { %v412_v24 = vpop.eup %411 }
 0x1fb   :  { %v278_v26 = vmul.f32 1.0614054, %v412_v24 }
 0x1fc   :  { %v414_v27 = vpop.eup %413 }
 0x1fd   :  { %v280_v28 = vadd.f32 -1.4531521, %v278_v26  ;;  %v279_v31 = vmul.f32 1.0614054, %v414_v27  ;;  %v416_v46 = vpop.eup %415 }
 0x1fe   :  { %v418_v50 = vpop.eup %417 }
 0x1ff   :  { %v282_v32 = vmul.f32 %v412_v24, %v280_v28  ;;  %v281_v33 = vadd.f32 -1.4531521, %v279_v31 }
 0x201   :  { %v284_v34 = vadd.f32 1.4214138, %v282_v32  ;;  %v283_v36 = vmul.f32 %v414_v27, %v281_v33 }
 0x203   :  { %v286_v37 = vmul.f32 %v412_v24, %v284_v34  ;;  %v285_v38 = vadd.f32 1.4214138, %v283_v36 }
 0x205   :  { %v288_v39 = vadd.f32 -0.28449672, %v286_v37  ;;  %v287_v40 = vmul.f32 %v414_v27, %v285_v38 }
 0x207   :  { %v290_v41 = vmul.f32 %v412_v24, %v288_v39  ;;  %v289_v42 = vadd.f32 -0.28449672, %v287_v40 }
 0x209   :  { %v292_v43 = vadd.f32 0.2548296, %v290_v41  ;;  %v291_v44 = vmul.f32 %v414_v27, %v289_v42 }
 0x20b   :  { %v294_v45 = vmul.f32 %v412_v24, %v292_v43  ;;  %v293_v47 = vadd.f32 0.2548296, %v291_v44 }
 0x20d   :  { %v304_v48 = vmul.f32 %v416_v46, %v294_v45  ;;  %v295_v49 = vmul.f32 %v414_v27, %v293_v47 }
 0x20f   :  { %v306_v51 = vsub.f32 1.0, %v304_v48  ;;  %v305_v53 = vmul.f32 %v418_v50, %v295_v49 }
 0x211   :  { %v308_v54 = vmul.f32 %v306_v51, %v268_v52  ;;  %v307_v55 = vsub.f32 1.0, %v305_v53 }
 0x213   :  { %v310_v58 = vadd.f32 1.0, %v308_v54  ;;  %v309_v60 = vmul.f32 %v307_v55, %v269_v59 }
 0x215   :  { %v312_v61 = vmul.f32 %v310_v58, %v262_v56  ;;  %v311_v63 = vadd.f32 1.0, %v309_v60 }
 0x217   :  { %314 = vst.msk [vmem:[#allocation2] sm:$0xff] %vm52_vm1, %v312_v61  ;;  %v313_v0 = vmul.f32 %v311_v63, %v263_v62 }
 0x219   :  { %315 = vst.msk [vmem:[#allocation2 + $0x8] sm:$0xff] %vm52_vm1, %v313_v0 }
 0x21a   :  { %430 = shalt.err (!%p427_p4)
}
 0x21b   :  { %s431_s19 = scalar_lea.hbm %s542_s5, 256 }
 0x21c   :  { %p432_p5 = scmp.ne.s32.totalorder %s542_s5, %s431_s19  ;;  %p435_p6 = scmp.lt.u32.totalorder %s431_s19, %s542_s5 }
 0x21e   :  { %p437_p7 = pnand %p435_p6, %p432_p5 }
 0x220   :  { %440 = shalt.err (!%p437_p7)
}
 0x221   :  { %s447_s24 = smov 128   ;;  %s448_s25 = smov 8  }
 0x222   :  { %327 = dma.vmem_to_hbm [thread:$0]  %s322_s15, 256, %s542_s5, [#allocation3], %s447_s24, %s447_s24, %s448_s25  }
 0x223   :  { %441 = dma.done.wait [#allocation3], 256  }
 0x224   :  { %442 = vsyncadd [#allocation3], 4294967040 }
 0x225   :  { %331 = vsyncpa [#allocation3], 1 }

</bundles_post_ra>
